<compile_context>
chip_gen: v5e
topology: v5e:2x2
jax: 0.10.0
libtpu: 0.0.40
codegen_flags: <defaults>
</compile_context>

<pallas_src>
import functools

import jax
import jax.numpy as jnp
from jax.experimental import pallas as pl
from jax.experimental.pallas import tpu as pltpu


def _round_up(a, b):
    return ((a + b - 1) // b) * b


def _learned_pe_kernel(xt_ref, w_ref, b_ref, o_ref, fmj_ref, *,
                       in_channels, proj_dim, out_dim):
    """One lane-tile of the LearnedPE forward.

    xt_ref : (C, tile_n)         VMEM  x transposed (rows of x on the lanes)
    w_ref  : (P, C)              VMEM  torch Linear weight (resident)
    b_ref  : (P, 1)              VMEM  bias as a column (resident)
    o_ref  : (tile_n, 2P + C)    VMEM  row-major output tile
    fmj_ref: (pad_rows, tile_n)  VMEM  feature-major staging scratch
    """
    xt = xt_ref[...]                     # (C, tile_n)  f32
    w = w_ref[...]                       # (P, C)       f32
    b = b_ref[...]                       # (P, 1)       f32

    # K = C (tiny) contraction on the VPU, lane-major, bias folded into the
    # first FMA:  x_proj^T[p, n] = b[p] + sum_c W[p, c] * x[n, c]
    x_proj_t = w[:, 0:1] * xt[0:1, :] + b
    for ci in range(1, in_channels):                 # static, C-1 iterations
        x_proj_t = x_proj_t + w[:, ci:ci + 1] * xt[ci:ci + 1, :]

    # Lane-dense transcendentals, staged feature-major at sublane-aligned
    # offsets (0, P, 2P) — full unmasked stores except the tiny C-row block.
    fmj_ref[0:proj_dim, :] = jnp.sin(x_proj_t)
    fmj_ref[proj_dim:2 * proj_dim, :] = jnp.cos(x_proj_t)
    fmj_ref[2 * proj_dim:2 * proj_dim + in_channels, :] = xt
    # Rows >= out_dim of the scratch stay uninitialized; they are transposed
    # (pure data movement) and sliced away before the store.

    # Single XLU transpose of the full staging tile (dims are multiples of the
    # native (8,128) tiling), then one store of the live columns.
    o_ref[...] = jnp.transpose(fmj_ref[...])[:, :out_dim]


def learned_pe_forward(x, weight, bias, *, tile_n=4096):
    """x: (N, C), weight: (P, C) (torch Linear layout), bias: (P,).

    Returns (N, 2P + C) = [sin(x @ W^T + b) | cos(x @ W^T + b) | x].
    """
    n, c = x.shape
    p = weight.shape[0]
    assert weight.shape == (p, c)
    assert bias.shape == (p,)
    out_dim = 2 * p + c

    # Tiny one-time layout work on the XLA side: x -> (C, N) so the kernel's
    # lane axis is the row axis of x, and the bias becomes a (P, 1) column.
    xt = jnp.transpose(x)                 # (C, N)
    b_col = bias.reshape(p, 1)            # (P, 1)

    # Lane-tile: multiple of 128, capped so large N keeps >= 4 grid steps
    # (two v7x TensorCores + pipelining), defaulting to 4096 rows.
    tn_cap = _round_up(max(-(-n // 4), 128), 128)
    tn = min(tile_n, tn_cap)
    grid = pl.cdiv(n, tn)

    # Staging scratch rows padded up to a multiple of 128 so the in-kernel
    # transpose never hits a padded-transpose path.
    pad_rows = _round_up(out_dim, 128)

    kernel = functools.partial(_learned_pe_kernel, in_channels=c,
                               proj_dim=p, out_dim=out_dim)

    return pl.pallas_call(
        kernel,
        out_shape=jax.ShapeDtypeStruct((n, out_dim), jnp.float32),
        grid_spec=pltpu.PrefetchScalarGridSpec(
            num_scalar_prefetch=0,
            grid=(grid,),
            in_specs=[
                pl.BlockSpec((c, tn), lambda i: (0, i)),   # x^T lane-tile
                pl.BlockSpec((p, c), lambda i: (0, 0)),    # weight (resident)
                pl.BlockSpec((p, 1), lambda i: (0, 0)),    # bias (resident)
            ],
            out_specs=pl.BlockSpec((tn, out_dim), lambda i: (i, 0)),
            scratch_shapes=[pltpu.VMEM((pad_rows, tn), jnp.float32)],
        ),
        compiler_params=pltpu.CompilerParams(
            dimension_semantics=("parallel",),
        ),
    )(xt, weight, b_col)


def make_learned_pe_params(in_channels, num_encoding_functions):
    """Deterministic parameter init matching LearnedPE.init_weights().

    The frequency matrix overwrites the uniform init in the torch code:
    weight[f_out, c_in] = 2**k on channel c_in's block, else 0.  The bias keeps
    a deterministic uniform init with the torch Linear bound 1/sqrt(C).
    """
    c, f = in_channels, num_encoding_functions
    lin = 2.0 ** jnp.linspace(0.0, f - 1, f, dtype=jnp.float32)          # (F,)
    w = jnp.zeros((c, f * c), dtype=jnp.float32)
    for i in range(c):
        w = w.at[i, i * f:(i + 1) * f].set(lin)
    weight = w.T                                   # (P, C) torch Linear layout

    bound = 1.0 / jnp.sqrt(jnp.float32(c))
    bias = jax.random.uniform(
        jax.random.PRNGKey(0), (f * c,), dtype=jnp.float32,
        minval=-bound, maxval=bound)
    return weight, bias


def learned_pe_reference(x, weight, bias):
    x_proj = jnp.dot(x, weight.T, precision=jax.lax.Precision.HIGHEST) + bias
    return jnp.concatenate([jnp.sin(x_proj), jnp.cos(x_proj), x], axis=-1)


if __name__ == "__main__":
    # Small shapes consistent with a point-encoding module: N 3-D points
    # (normalized coordinates), F encoding functions.  N is deliberately not a
    # multiple of 128 to exercise the ragged-last-block (masked write) path.
    N, C, F = 300, 3, 8

    key = jax.random.PRNGKey(0)
    x = jax.random.uniform(key, (N, C), dtype=jnp.float32)   # coords in [0, 1)

    weight, bias = make_learned_pe_params(C, F)

    out = jax.block_until_ready(learned_pe_forward(x, weight, bias))

    ref = learned_pe_reference(x, weight, bias)
    assert out.shape == (N, 2 * C * F + C), out.shape
    assert jnp.allclose(out, ref, atol=2e-4, rtol=2e-4), "mismatch vs reference"

    print("KERNEL_OK")
</pallas_src>

<mosaic_0001>
module attributes {stable_mosaic.version = 11 : i64} {
  func.func @_learned_pe_kernel(%arg0: i32, %arg1: memref<3x128xf32, #tpu.memory_space<vmem>>, %arg2: memref<24x3xf32, #tpu.memory_space<vmem>>, %arg3: memref<24x1xf32, #tpu.memory_space<vmem>>, %arg4: memref<128x51xf32, #tpu.memory_space<vmem>>, %arg5: memref<128x128xf32, #tpu.memory_space<vmem>>) attributes {dimension_semantics = [#tpu.dimension_semantics<parallel>], iteration_bounds = array<i64: 3>, scalar_prefetch = 0 : i64, scratch_operands = 1 : i64, tpu.core_type = #tpu.core_type<tc>, window_params = [{transform_indices = @transform_0, window_bounds = array<i64: 3, 128>}, {pipeline_mode = #tpu.pipeline_mode<synchronous>, transform_indices = @transform_1, window_bounds = array<i64: 24, 3>}, {pipeline_mode = #tpu.pipeline_mode<synchronous>, transform_indices = @transform_2, window_bounds = array<i64: 24, 1>}, {transform_indices = @transform_3, window_bounds = array<i64: 128, 51>}]} {
    %c0 = arith.constant 0 : index
    %c0_0 = arith.constant 0 : index
    %0 = vector.load %arg1[%c0, %c0_0] : memref<3x128xf32, #tpu.memory_space<vmem>>, vector<3x128xf32>
    %c0_1 = arith.constant 0 : index
    %c0_2 = arith.constant 0 : index
    %1 = vector.load %arg2[%c0_1, %c0_2] : memref<24x3xf32, #tpu.memory_space<vmem>>, vector<24x3xf32>
    %c0_3 = arith.constant 0 : index
    %c0_4 = arith.constant 0 : index
    %2 = vector.load %arg3[%c0_3, %c0_4] : memref<24x1xf32, #tpu.memory_space<vmem>>, vector<24x1xf32>
    %3 = vector.extract_strided_slice %1 {offsets = [0, 0], sizes = [24, 1], strides = [1, 1]} : vector<24x3xf32> to vector<24x1xf32>
    %4 = vector.extract_strided_slice %0 {offsets = [0, 0], sizes = [1, 128], strides = [1, 1]} : vector<3x128xf32> to vector<1x128xf32>
    %5 = vector.broadcast %3 : vector<24x1xf32> to vector<24x128xf32>
    %6 = vector.broadcast %4 : vector<1x128xf32> to vector<24x128xf32>
    %7 = arith.mulf %5, %6 : vector<24x128xf32>
    %8 = vector.broadcast %2 : vector<24x1xf32> to vector<24x128xf32>
    %9 = arith.addf %7, %8 : vector<24x128xf32>
    %10 = vector.extract_strided_slice %1 {offsets = [0, 1], sizes = [24, 1], strides = [1, 1]} : vector<24x3xf32> to vector<24x1xf32>
    %11 = vector.extract_strided_slice %0 {offsets = [1, 0], sizes = [1, 128], strides = [1, 1]} : vector<3x128xf32> to vector<1x128xf32>
    %12 = vector.broadcast %10 : vector<24x1xf32> to vector<24x128xf32>
    %13 = vector.broadcast %11 : vector<1x128xf32> to vector<24x128xf32>
    %14 = arith.mulf %12, %13 : vector<24x128xf32>
    %15 = arith.addf %9, %14 : vector<24x128xf32>
    %16 = vector.extract_strided_slice %1 {offsets = [0, 2], sizes = [24, 1], strides = [1, 1]} : vector<24x3xf32> to vector<24x1xf32>
    %17 = vector.extract_strided_slice %0 {offsets = [2, 0], sizes = [1, 128], strides = [1, 1]} : vector<3x128xf32> to vector<1x128xf32>
    %18 = vector.broadcast %16 : vector<24x1xf32> to vector<24x128xf32>
    %19 = vector.broadcast %17 : vector<1x128xf32> to vector<24x128xf32>
    %20 = arith.mulf %18, %19 : vector<24x128xf32>
    %21 = arith.addf %15, %20 : vector<24x128xf32>
    %22 = math.sin %21 : vector<24x128xf32>
    %c0_5 = arith.constant 0 : index
    %c0_6 = arith.constant 0 : index
    %23 = vector.load %arg5[%c0_5, %c0_6] : memref<128x128xf32, #tpu.memory_space<vmem>>, vector<24x128xf32>
    tpu.vector_store %arg5[%c0_5, %c0_6], %22 {strides = array<i32>} : memref<128x128xf32, #tpu.memory_space<vmem>>, vector<24x128xf32>,
    %24 = math.cos %21 : vector<24x128xf32>
    %c24 = arith.constant 24 : index
    %c0_7 = arith.constant 0 : index
    %25 = vector.load %arg5[%c24, %c0_7] : memref<128x128xf32, #tpu.memory_space<vmem>>, vector<24x128xf32>
    tpu.vector_store %arg5[%c24, %c0_7], %24 {strides = array<i32>} : memref<128x128xf32, #tpu.memory_space<vmem>>, vector<24x128xf32>,
    %c48 = arith.constant 48 : index
    %c0_8 = arith.constant 0 : index
    %26 = vector.load %arg5[%c48, %c0_8] : memref<128x128xf32, #tpu.memory_space<vmem>>, vector<3x128xf32>
    tpu.vector_store %arg5[%c48, %c0_8], %0 {strides = array<i32>} : memref<128x128xf32, #tpu.memory_space<vmem>>, vector<3x128xf32>,
    %c0_9 = arith.constant 0 : index
    %c0_10 = arith.constant 0 : index
    %27 = vector.load %arg5[%c0_9, %c0_10] : memref<128x128xf32, #tpu.memory_space<vmem>>, vector<128x128xf32>
    %28 = tpu.transpose %27, [1, 0] : vector<128x128xf32> -> vector<128x128xf32>
    %29 = vector.extract_strided_slice %28 {offsets = [0, 0], sizes = [128, 51], strides = [1, 1]} : vector<128x128xf32> to vector<128x51xf32>
    %c0_11 = arith.constant 0 : index
    %c0_12 = arith.constant 0 : index
    %30 = vector.load %arg4[%c0_11, %c0_12] : memref<128x51xf32, #tpu.memory_space<vmem>>, vector<128x51xf32>
    tpu.vector_store %arg4[%c0_11, %c0_12], %29 {strides = array<i32>} : memref<128x51xf32, #tpu.memory_space<vmem>>, vector<128x51xf32>,
    return
  }
  func.func @transform_0(%arg0: i32) -> (i32, i32) {
    %c0_i32 = arith.constant 0 : i32
    %c0_i32_0 = arith.constant 0 : i32
    return %c0_i32, %arg0 : i32, i32
  }
  func.func @transform_1(%arg0: i32) -> (i32, i32) {
    %c0_i32 = arith.constant 0 : i32
    %c0_i32_0 = arith.constant 0 : i32
    %c0_i32_1 = arith.constant 0 : i32
    return %c0_i32, %c0_i32_0 : i32, i32
  }
  func.func @transform_2(%arg0: i32) -> (i32, i32) {
    %c0_i32 = arith.constant 0 : i32
    %c0_i32_0 = arith.constant 0 : i32
    %c0_i32_1 = arith.constant 0 : i32
    return %c0_i32, %c0_i32_0 : i32, i32
  }
  func.func @transform_3(%arg0: i32) -> (i32, i32) {
    %c0_i32 = arith.constant 0 : i32
    %c0_i32_0 = arith.constant 0 : i32
    return %arg0, %c0_i32 : i32, i32
  }
}

</mosaic_0001>

<bundles_post_ra>
// kernel: tpu_custom_call.1
= control target key start
LH: loop header
LB: loop body
LE: loop exit
PB: predicated region body
PF: predicated region fallthrough
CT: control target
= control target key end

     0   :  { %s1791_s12 = smov 0   ;;  %s1793_s13 = smov 0   ;;  %s2239_s0 = inlined_call_operand.vmem [shape: f32[3,300], index: 0, kind: input, shape index: {}]   ;;  %s2240_s1 = inlined_call_operand.vmem [shape: f32[24,3], index: 1, kind: input, shape index: {}]   ;;  %s2241_s2 = inlined_call_operand.vmem [shape: f32[24,1], index: 2, kind: input, shape index: {}]   ;;  %s2242_s3 = inlined_call_operand.vmem [shape: f32[300,51], index: 3, kind: output, shape index: {}]  }
   0x1   :  { %s1795_s14 = smov 0  }
   0x2 LB: > { %s1804_s15 = sadd.s32 4294967295, %s1728_s14   ;;  %s1806_s16 = sadd.s32 1, %s1728_s14   ;;  %s1728_s14 = sphi %s1795_s14, %s2255_s14   ;;  %s1724_s13 = sphi %s1793_s13, %s2254_s13   ;;  %s1720_s12 = sphi %s1791_s12, %s2253_s12  }
   0x3   : > { %s85_s17 = ssub.s32 %s1728_s14, %s1806_s16  ;;  %s88_s18 = sadd.s32 1, %s1724_s13 }
   0x4   : > { %p86_p0 = scmp.eq.s32.totalorder %s85_s17, 0  ;;  %p98_p1 = scmp.ne.s32.totalorder %s1724_s13, %s1720_s12 }
   0x5   : > { %p99_p2 = scmp.eq.s32.totalorder %s1804_s15, 2  ;;  %p1527_p3 = scmp.ge.s32.totalorder %s1728_s14, 1 }
   0x6   : > { %s1814_s19 = scalar_select %p86_p0, %s1724_s13, %s88_s18  }
   0x7   : > { %p1816_p4 = por %p99_p2, %p98_p1  ;;  %p136_p5 = scmp.lt.s32.totalorder %s1728_s14, 4 }
   0x9   : > { %p137_p6 = pnand %p1527_p3, %p136_p5 }
   0xa   : > { %p158_p7 = scmp.lt.s32.totalorder (!%p137_p6), %s1804_s15, 2  ;;  %s155_s11 = sand.u32 (!%p137_p6), 1, %s1720_s12  }
   0xb   : > { %140 = sbr.rel (%p137_p6) target bundleno = 628 (0x274), region = 32  ;;  %s1528_s14 = sshll.u32 (!%p137_p6), %s155_s11, 7 }
   0xc   : > { %s2101_s17 = scalar_lea.vmem (!%p137_p6), [#allocation3], %s1528_s14  }
  0x10   : > { %v168_v0 = vld [vmem:[%s2240_s1] sm:$0xff]  ;;  %v1762_v1 = vmov 1   ;;  %v1763_v2 = vmov 0   ;;  %v1764_v3 = vmov 2   ;;  %v169_v5 = vld [vmem:[%s2240_s1 + $0x8] sm:$0xff]  ;;  %v170_v7 = vld [vmem:[%s2240_s1 + $0x10] sm:$0xff] }
  0x11   : > { %1666 = vset.pattern.permute.xlu1 %v1762_v1  ;;  %1665 = vset.pattern.permute.xlu0 %v1763_v2  ;;  %v171_v4 = vld [vmem:[%s2241_s2] sm:$0xff]  ;;  %v172_v6 = vld [vmem:[%s2241_s2 + $0x8] sm:$0xff]  ;;  %v173_v8 = vld [vmem:[%s2241_s2 + $0x10] sm:$0xff]  ;;  %s159_s6 = scalar_select %p158_p7, %s1804_s15, 2  ;;  %v1765_v56 = vmov 683565275  }
  0x12   : > { %212 = vperm.xlu1 %1666, %v168_v0   ;;  %176 = vperm.xlu0 %1665, %v168_v0   ;;  %v1766_v58 = vmov 2475754826   ;;  %v1767_v60 = vmov 2131351028   ;;  %v1768_v62 = vmov 2102212464  }
  0x13   : > { %1668 = vset.pattern.permute.xlu2 %v1764_v3  ;;  %s1529_s7 = sshll.u32 %s159_s6, 2  ;;  %s1549_s12 = sshll.u32 (%p1816_p4), %s1804_s15, 4 }
  0x14   : > { %231 = vperm.xlu2 %1668, %v168_v0   ;;  %s161_s10 = scalar_lea.vmem %s2239_s0, %s1529_s7  ;;  %s1565_s18 = sshll.u32 (%p1816_p4), %s1804_s15, 7 }
  0x15   : > { %v167_v9 = vld [vmem:[%s161_s10] sm:$0x7]  ;;  %s1256_s21 = ssub.s32 (%p1816_p4), 38, %s1549_s12  ;;  %s2142_s24 = scalar_lea.vmem (%p1816_p4), %s2242_s3, %s1565_s18  }
  0x16   : > { %1182 = vst [vmem:[#allocation2 + $0x8] sm:$0x7] %v167_v9  ;;  %v189_v13 = vperm.slane %v167_v9, 0  ;;  %v223_v15 = vperm.slane %v167_v9, 1  ;;  %v1846_v16 = vperm.slane %v167_v9, 2  ;;  %p1257_p8 = scmp.lt.s32.totalorder (%p1816_p4), %s1256_s21, 16 }
  0x1a   : > { %1667 = vset.pattern.permute.xlu1 %v1763_v2  ;;  %195 = vperm.xlu0 %1665, %v171_v4   ;;  %v1769_v4 = vmov 920167782  }
  0x1b   : > { %181 = vperm.xlu1 %1667, %v169_v5  }
  0x1c   : > { %1669 = vset.pattern.permute.xlu2 %v1763_v2 }
  0x1d   : > { %200 = vperm.xlu2 %1669, %v172_v6  }
  0x22   : > { %1670 = vset.pattern.permute.xlu0 %v1762_v1 }
  0x23   : > { %186 = vperm.xlu1 %1667, %v170_v7   ;;  %216 = vperm.xlu0 %1670, %v169_v5  }
  0x25   : > { %1671 = vset.pattern.permute.xlu2 %v1764_v3 }
  0x26   : > { %235 = vperm.xlu2 %1671, %v169_v5  }
  0x2b   : > { %205 = vperm.xlu1 %1667, %v173_v8   ;;  %1673 = vset.pattern.permute.xlu0 %v1764_v3 }
  0x2c   : > { %239 = vperm.xlu0 %1673, %v170_v7  }
  0x2e   : > { %1672 = vset.pattern.permute.xlu2 %v1762_v1 }
  0x2f   : > { %220 = vperm.xlu2 %1672, %v170_v7   ;;  %v1770_v7 = vmov 1326507024  }
  0x6e   : > { %v232_v10 = vpop.permute.xlu2 %231 }
  0x6f   : > { %v243_v22 = vmul.f32 %v1846_v16, %v232_v10 }
  0x77   : > { %v201_v14 = vpop.permute.xlu2 %200 }
  0x80   : > { %v236_v25 = vpop.permute.xlu2 %235 }
  0x81   : > { %v244_v37 = vmul.f32 %v1846_v16, %v236_v25 }
  0x84   : > { %v213_v11 = vpop.permute.xlu1 %212  ;;  %v177_v12 = vpop.permute.xlu0 %176 }
  0x85   : > { %v190_v17 = vmul.f32 %v189_v13, %v177_v12  ;;  %v224_v19 = vmul.f32 %v223_v15, %v213_v11 }
  0x89   : > { %v221_v42 = vpop.permute.xlu2 %220 }
  0x8a   : > { %v226_v51 = vmul.f32 %v223_v15, %v221_v42 }
  0x8c   : > { %v196_v18 = vpop.permute.xlu0 %195 }
  0x8d   : > { %v208_v20 = vadd.f32 %v196_v18, %v190_v17  ;;  %v182_v21 = vpop.permute.xlu1 %181 }
  0x8e   : > { %v191_v26 = vmul.f32 %v189_v13, %v182_v21 }
  0x8f   : > { %v227_v23 = vadd.f32 %v224_v19, %v208_v20 }
  0x90   : > { %v209_v33 = vadd.f32 %v201_v14, %v191_v26 }
  0x91   : > { %v1849_v24 = vadd.f32 %v243_v22, %v227_v23 }
  0x93   : > { %v249_v27 = vand.u32 2147483647, %v1849_v24  ;;  %v252_v28 = vand.u32 2139095040, %v1849_v24 }
  0x95   : > { %v253_v29 = vshrl.u32 %v252_v28, 23  ;;  %v256_v30 = vand.u32 8388607, %v249_v27  ;;  %v187_v31 = vpop.permute.xlu1 %186  ;;  %v217_v32 = vpop.permute.xlu0 %216 }
  0x96   : > { %v225_v34 = vmul.f32 %v223_v15, %v217_v32  ;;  %v192_v47 = vmul.f32 %v189_v13, %v187_v31 }
  0x97   : > { %v1530_v35 = vadd.s32 4294967169, %v253_v29  ;;  %v257_v36 = vor.u32 8388608, %v256_v30 }
  0x98   : > { %v228_v38 = vadd.f32 %v225_v34, %v209_v33 }
  0x99   : > { %v259_v39 = vadd.s32 1, %v1530_v35  ;;  %v1856_v40 = vshll.u32 %v257_v36, 8 }
  0x9a   : > { %v1858_v41 = vadd.f32 %v244_v37, %v228_v38 }
  0x9b   : > { %vm260_vm0 = vcmp.gt.s32.totalorder %v259_v39, 0  ;;  %v298_v50 = vand.u32 65535, %v1856_v40  ;;  %v299_v32 = vshrl.u32 %v1856_v40, 16 }
  0x9c   : > { %v261_v43 = vsel %vm260_vm0, %v259_v39, 0  ;;  %v404_v44 = vand.u32 2147483647, %v1858_v41  ;;  %v407_v45 = vand.u32 2139095040, %v1858_v41 }
  0x9d   : > { %v263_v46 = vand.u32 31, %v261_v43  ;;  %v206_v48 = vpop.permute.xlu1 %205  ;;  %v262_v49 = vshrl.u32 %v261_v43, 5 }
  0x9e   : > { %v408_v53 = vshrl.u32 %v407_v45, 23  ;;  %v1865_v54 = vand.u32 8388607, %v404_v44  ;;  %v210_v55 = vadd.f32 %v206_v48, %v192_v47  ;;  %v240_v33 = vpop.permute.xlu0 %239 }
  0x9f   : > { %v264_v52 = vsub.s32 32, %v263_v46  ;;  %v266_v57 = vshll.u32 %v1765_v56, %v263_v46  ;;  %v269_v59 = vshll.u32 %v1766_v58, %v263_v46  ;;  %v272_v61 = vshll.u32 %v1767_v60, %v263_v46 }
  0xa0   : > { %v275_v63 = vshll.u32 %v1768_v62, %v263_v46  ;;  %v278_v5 = vshll.u32 %v1769_v4, %v263_v46  ;;  %vm281_vm1 = vcmp.lt.s32.totalorder %v262_v49, 1  ;;  %vm282_vm2 = vcmp.lt.s32.totalorder %v262_v49, 2 }
  0xa1   : > { %v267_v0 = vshrl.u32 %v1766_v58, %v264_v52  ;;  %v270_v1 = vshrl.u32 %v1767_v60, %v264_v52  ;;  %v273_v3 = vshrl.u32 %v1768_v62, %v264_v52  ;;  %v276_v6 = vshrl.u32 %v1769_v4, %v264_v52 }
  0xa2   : > { %v279_v8 = vshrl.u32 %v1770_v7, %v264_v52  ;;  %v1533_v12 = vadd.s32 4294967169, %v408_v53  ;;  %vm284_vm3 = vcmp.lt.s32.totalorder %v262_v49, 4  ;;  %v229_v15 = vadd.f32 %v226_v51, %v210_v55 }
  0xa3   : > { %v268_v9 = vor.u32 %v267_v0, %v266_v57  ;;  %v271_v10 = vor.u32 %v270_v1, %v269_v59  ;;  %v274_v11 = vor.u32 %v273_v3, %v272_v61  ;;  %v277_v13 = vor.u32 %v276_v6, %v275_v63 }
  0xa4   : > { %v280_v14 = vor.u32 %v279_v8, %v278_v5  ;;  %v265_v17 = vshrl.u32 %v1765_v56, %v264_v52  ;;  %vm283_vm4 = vcmp.lt.s32.totalorder %v262_v49, 3  ;;  %v414_v23 = vadd.s32 1, %v1533_v12 }
  0xa5   : > { %v286_v18 = vsel %vm284_vm3, %v274_v11, 2102212464  ;;  %v289_v19 = vsel %vm281_vm1, %v268_v9, %v271_v10  ;;  %v293_v20 = vsel %vm281_vm1, %v271_v10, %v274_v11  ;;  %v290_v21 = vsel %vm284_vm3, %v277_v13, 920167782 }
  0xa6   : > { %v294_v22 = vsel %vm284_vm3, %v280_v14, 1326507024  ;;  %v285_v25 = vsel %vm281_vm1, %v265_v17, %v268_v9  ;;  %v287_v26 = vsel %vm283_vm4, %v271_v10, %v286_v18  ;;  %v291_v28 = vsel %vm283_vm4, %v274_v11, %v290_v21 }
  0xa7   : > { %v295_v29 = vsel %vm283_vm4, %v277_v13, %v294_v22  ;;  %v292_v30 = vsel %vm282_vm2, %v289_v19, %v291_v28  ;;  %vm415_vm5 = vcmp.gt.s32.totalorder %v414_v23, 0  ;;  %v1885_v38 = vsel %vm282_vm2, %v285_v25, %v287_v26 }
  0xa8   : > { %v296_v31 = vsel %vm282_vm2, %v293_v20, %v295_v29  ;;  %v322_v36 = vand.u32 65535, %v292_v30  ;;  %v323_v37 = vshrl.u32 %v292_v30, 16  ;;  %v412_v39 = vor.u32 8388608, %v1865_v54 }
  0xa9   : > { %v300_v34 = vand.u32 65535, %v296_v31  ;;  %v301_v35 = vshrl.u32 %v296_v31, 16  ;;  %v416_v42 = vsel %vm415_vm5, %v414_v23, 0  ;;  %v245_v47 = vmul.f32 %v1846_v16, %v240_v33 }
  0xaa   : > { %v324_v51 = vmul.u32 %v322_v36, %v298_v50  ;;  %v325_v52 = vmul.u32 %v323_v37, %v298_v50  ;;  %v326_v53 = vmul.u32 %v322_v36, %v299_v32  ;;  %v327_v61 = vmul.u32 %v323_v37, %v299_v32 }
  0xab   : > { %v302_v43 = vmul.u32 %v300_v34, %v298_v50  ;;  %v303_v45 = vmul.u32 %v301_v35, %v298_v50  ;;  %v304_v46 = vmul.u32 %v300_v34, %v299_v32  ;;  %v305_v48 = vmul.u32 %v301_v35, %v299_v32 }
  0xac   : > { %v328_v49 = vshll.u32 %v325_v52, 16  ;;  %v329_v0 = vshrl.u32 %v325_v52, 16  ;;  %v330_v1 = vshll.u32 %v326_v53, 16  ;;  %v331_v3 = vshrl.u32 %v326_v53, 16 }
  0xad   : > { %v306_v55 = vshll.u32 %v303_v45, 16  ;;  %v307_v57 = vshrl.u32 %v303_v45, 16  ;;  %v308_v59 = vshll.u32 %v304_v46, 16  ;;  %v309_v63 = vshrl.u32 %v304_v46, 16 }
  0xae   : > { %v418_v5 = vand.u32 31, %v416_v42  ;;  %vm332_vm7 = vc.u32 %v324_v51, %v328_v49  ;;  %v334_v16 = vadd.s32 %v328_v49, %v324_v51  ;;  %v1890_v8 = vadd.f32 %v245_v47, %v229_v15 }
  0xaf   : > { %vm310_vm6 = vc.u32 %v302_v43, %v306_v55  ;;  %v312_v54 = vadd.s32 %v306_v55, %v302_v43  ;;  %v333_v9 = vsel %vm332_vm7, 1, %v1763_v2  ;;  %v1896_v13 = vshrl.u32 %v416_v42, 5 }
  0xb0   : > { %v311_v6 = vsel %vm310_vm6, 1, %v1763_v2  ;;  %v1893_v10 = vsub.s32 32, %v418_v5  ;;  %v335_v12 = vadd.s32 %v333_v9, %v327_v61  ;;  %vm336_vm9 = vc.u32 %v334_v16, %v330_v1 }
  0xb1   : > { %v313_v50 = vadd.s32 %v311_v6, %v305_v48  ;;  %vm314_vm8 = vc.u32 %v312_v54, %v308_v59  ;;  %v337_v17 = vsel %vm336_vm9, 1, %v1763_v2  ;;  %v1899_v18 = vadd.s32 %v334_v16, %v330_v1 }
  0xb2   : > { %v315_v11 = vsel %vm314_vm8, 1, %v1763_v2  ;;  %v421_v15 = vshll.u32 %v1765_v56, %v418_v5  ;;  %v339_v19 = vadd.s32 %v337_v17, %v335_v12  ;;  %v422_v20 = vshrl.u32 %v1766_v58, %v1893_v10 }
  0xb3   : > { %v317_v14 = vadd.s32 %v315_v11, %v313_v50  ;;  %v424_v21 = vshll.u32 %v1766_v58, %v418_v5  ;;  %v425_v22 = vshrl.u32 %v1767_v60, %v1893_v10  ;;  %v427_v25 = vshll.u32 %v1767_v60, %v418_v5 }
  0xb4   : > { %v428_v26 = vshrl.u32 %v1768_v62, %v1893_v10  ;;  %v430_v28 = vshll.u32 %v1768_v62, %v418_v5  ;;  %v340_v29 = vadd.s32 %v339_v19, %v329_v0  ;;  %v1911_v30 = vor.u32 %v422_v20, %v421_v15 }
  0xb5   : > { %v318_v23 = vadd.s32 %v317_v14, %v307_v57  ;;  %v1913_v31 = vor.u32 %v425_v22, %v424_v21  ;;  %v431_v32 = vshrl.u32 %v1769_v4, %v1893_v10  ;;  %v433_v35 = vshll.u32 %v1769_v4, %v418_v5 }
  0xb6   : > { %v1919_v34 = vor.u32 %v428_v26, %v427_v25  ;;  %v434_v36 = vshrl.u32 %v1770_v7, %v1893_v10  ;;  %v341_v37 = vadd.s32 %v340_v29, %v331_v3  ;;  %vm436_vm11 = vcmp.lt.s32.totalorder %v1896_v13, 1 }
  0xb7   : > { %v1917_v33 = vadd.s32 %v318_v23, %v309_v63  ;;  %v432_v42 = vor.u32 %v431_v32, %v430_v28  ;;  %v1927_v45 = vshll.u32 %v412_v39, 8  ;;  %v342_v46 = vmul.u32 %v1856_v40, %v1885_v38 }
  0xb8   : > { %v435_v43 = vor.u32 %v434_v36, %v433_v35  ;;  %v345_v47 = vadd.s32 1, %v341_v37  ;;  %vm439_vm12 = vcmp.lt.s32.totalorder %v1896_v13, 4  ;;  %v444_v48 = vsel %vm436_vm11, %v1911_v30, %v1913_v31 }
  0xb9   : > { %vm344_vm10 = vc.u32 %v1917_v33, %v1899_v18  ;;  %vm438_vm13 = vcmp.lt.s32.totalorder %v1896_v13, 3  ;;  %v445_v51 = vsel %vm439_vm12, %v432_v42, 920167782  ;;  %v448_v39 = vsel %vm436_vm11, %v1913_v31, %v1919_v34 }
  0xba   : > { %v449_v40 = vsel %vm439_vm12, %v435_v43, 1326507024  ;;  %v346_v38 = vsel %vm344_vm10, %v345_v47, %v341_v37  ;;  %vm437_vm14 = vcmp.lt.s32.totalorder %v1896_v13, 2  ;;  %v446_v52 = vsel %vm438_vm13, %v1919_v34, %v445_v51 }
  0xbb   : > { %v450_v53 = vsel %vm438_vm13, %v432_v42, %v449_v40  ;;  %v347_v55 = vadd.s32 %v346_v38, %v342_v46  ;;  %v447_v57 = vsel %vm437_vm14, %v444_v48, %v446_v52  ;;  %v453_v61 = vand.u32 65535, %v1927_v45 }
  0xbc   : > { %v451_v59 = vsel %vm437_vm14, %v448_v39, %v450_v53  ;;  %v454_v63 = vshrl.u32 %v1927_v45, 16  ;;  %v478_v1 = vshrl.u32 %v447_v57, 16  ;;  %v477_v6 = vand.u32 65535, %v447_v57 }
  0xbd   : > { %v455_v49 = vand.u32 65535, %v451_v59  ;;  %v456_v0 = vshrl.u32 %v451_v59, 16  ;;  %v348_v54 = vadd.s32 536870912, %v347_v55  ;;  %vm251_vm3 = vcmp.lt.s32.totalorder %v1849_v24, 0 }
  0xbe   : > { %v480_v50 = vmul.u32 %v478_v1, %v453_v61  ;;  %v479_v20 = vmul.u32 %v477_v6, %v453_v61  ;;  %v481_v23 = vmul.u32 %v477_v6, %v454_v63  ;;  %v482_v29 = vmul.u32 %v478_v1, %v454_v63 }
  0xbf   : > { %v458_v3 = vmul.u32 %v456_v0, %v453_v61  ;;  %v459_v5 = vmul.u32 %v455_v49, %v454_v63  ;;  %v349_v16 = vshrl.u32 %v348_v54, 30  ;;  %v457_v9 = vmul.u32 %v455_v49, %v453_v61 }
  0xc0   : > { %v460_v14 = vmul.u32 %v456_v0, %v454_v63  ;;  %v483_v17 = vshll.u32 %v480_v50, 16  ;;  %v485_v37 = vshll.u32 %v481_v23, 16  ;;  %v420_v48 = vshrl.u32 %v1765_v56, %v1893_v10 }
  0xc1   : > { %v461_v11 = vshll.u32 %v458_v3, 16  ;;  %v350_v12 = vshll.u32 %v349_v16, 30  ;;  %v463_v15 = vshll.u32 %v459_v5, 16  ;;  %v462_v43 = vshrl.u32 %v458_v3, 16 }
  0xc2   : > { %vm487_vm1 = vc.u32 %v479_v20, %v483_v17  ;;  %v489_v35 = vadd.s32 %v483_v17, %v479_v20  ;;  %v441_v51 = vsel %vm439_vm12, %v1919_v34, 2102212464  ;;  %v464_v40 = vshrl.u32 %v459_v5, 16 }
  0xc3   : > { %vm465_vm15 = vc.u32 %v457_v9, %v461_v11  ;;  %v467_v19 = vadd.s32 %v461_v11, %v457_v9  ;;  %v351_v21 = vsub.s32 %v347_v55, %v350_v12  ;;  %v488_v32 = vsel %vm487_vm1, 1, %v1763_v2 }
  0xc4   : > { %v466_v22 = vsel %vm465_vm15, 1, %v1763_v2  ;;  %v490_v47 = vadd.s32 %v488_v32, %v482_v29  ;;  %vm491_vm4 = vc.u32 %v489_v35, %v485_v37  ;;  %v440_v53 = vsel %vm436_vm11, %v420_v48, %v1911_v30 }
  0xc5   : > { %v468_v25 = vadd.s32 %v466_v22, %v460_v14  ;;  %vm469_vm0 = vc.u32 %v467_v19, %v463_v15  ;;  %vm352_vm2 = vcmp.lt.s32.totalorder %v351_v21, 0  ;;  %v353_v26 = vsub.s32 0, %v351_v21 }
  0xc6   : > { %v470_v28 = vsel %vm469_vm0, 1, %v1763_v2  ;;  %v492_v52 = vsel %vm491_vm4, 1, %v1763_v2  ;;  %v484_v55 = vshrl.u32 %v480_v50, 16  ;;  %v562_v59 = vand.u32 2139095040, %v1890_v8 }
  0xc7   : > { %v354_v36 = vsel %vm352_vm2, %v353_v26, %v351_v21  ;;  %v472_v46 = vadd.s32 %v470_v28, %v468_v25  ;;  %v494_v57 = vadd.s32 %v492_v52, %v490_v47  ;;  %v373_v10 = vsub.s32 4, %v349_v16 }
  0xc8   : > { %v355_v42 = vclz %v354_v36  ;;  %v442_v34 = vsel %vm438_vm13, %v1913_v31, %v441_v51  ;;  %v486_v49 = vshrl.u32 %v481_v23, 16  ;;  %v563_v1 = vshrl.u32 %v562_v59, 23 }
  0xc9   : > { %v473_v38 = vadd.s32 %v472_v46, %v462_v43  ;;  %v495_v0 = vadd.s32 %v494_v57, %v484_v55  ;;  %v343_v54 = vadd.s32 %v1899_v18, %v1917_v33  ;;  %v493_v5 = vadd.s32 %v489_v35, %v485_v37 }
  0xca   : > { %v1531_v39 = vadd.s32 4294967294, %v355_v42  ;;  %v443_v6 = vsel %vm437_vm14, %v440_v53, %v442_v34  ;;  %v559_v9 = vand.u32 2147483647, %v1890_v8  ;;  %v1536_v11 = vadd.s32 4294967169, %v563_v1 }
  0xcb   : > { %v1974_v61 = vadd.s32 %v473_v38, %v464_v40  ;;  %v496_v50 = vadd.s32 %v495_v0, %v486_v49  ;;  %v374_v17 = vsel %vm251_vm3, %v373_v10, %v349_v16  ;;  %v497_v20 = vmul.u32 %v1927_v45, %v443_v6 }
  0xcc   : > { %vm1532_vm5 = vcmp.lt.s32.totalorder %v1531_v39, 0  ;;  %v569_v18 = vadd.s32 1, %v1536_v11  ;;  %vm1987_vm7 = vcmp.le.f32.partialorder %v249_v27, 0.7853982  ;;  %v566_v22 = vand.u32 8388607, %v559_v9 }
  0xcd   : > { %v358_v63 = vsel %vm1532_vm5, 0, %v1531_v39  ;;  %vm499_vm6 = vc.u32 %v1974_v61, %v493_v5  ;;  %v500_v15 = vadd.s32 1, %v496_v50  ;;  %v376_v16 = vsel %vm1987_vm7, 0, %v374_v17 }
  0xce   : > { %v359_v30 = vsub.s32 32, %v358_v63  ;;  %v363_v3 = vsub.s32 4294967266, %v358_v63  ;;  %v360_v31 = vshll.u32 %v351_v21, %v358_v63  ;;  %vm570_vm8 = vcmp.gt.s32.totalorder %v569_v18, 0 }
  0xcf   : > { %v501_v21 = vsel %vm499_vm6, %v500_v15, %v496_v50  ;;  %v571_v26 = vsel %vm570_vm8, %v569_v18, 0  ;;  %v393_v35 = vadd.s32 3, %v376_v16  ;;  %v567_v27 = vor.u32 8388608, %v566_v22 }
  0xd0   : > { %v361_v12 = vshrl.u32 %v343_v54, %v359_v30  ;;  %v364_v14 = vadd.s32 127, %v363_v3  ;;  %v502_v25 = vadd.s32 %v501_v21, %v497_v20  ;;  %v573_v28 = vand.u32 31, %v571_v26 }
  0xd1   : > { %v572_v49 = vshrl.u32 %v571_v26, 5  ;;  %v2013_v1 = vshll.u32 %v567_v27, 8  ;;  %v2015_v30 = vand.u32 3, %v393_v35  ;;  %v2017_v3 = vand.u32 3, %v376_v16 }
  0xd2   : > { %v362_v33 = vor.u32 %v361_v12, %v360_v31  ;;  %v365_v19 = vshll.u32 %v364_v14, 23  ;;  %v503_v32 = vadd.s32 536870912, %v502_v25  ;;  %v574_v36 = vsub.s32 32, %v573_v28 }
  0xd3   : > { %v576_v37 = vshll.u32 %v1765_v56, %v573_v28  ;;  %v579_v46 = vshll.u32 %v1766_v58, %v573_v28  ;;  %v582_v47 = vshll.u32 %v1767_v60, %v573_v28  ;;  %v585_v40 = vshll.u32 %v1768_v62, %v573_v28 }
  0xd4   : > { %v366_v23 = vor.u32 4788187, %v365_v19  ;;  %v369_v45 = vcvt.s32.f32 %v362_v33  ;;  %v1996_v43 = vshrl.u32 %v503_v32, 30  ;;  %v577_v48 = vshrl.u32 %v1766_v58, %v574_v36 }
  0xd5   : > { %v580_v51 = vshrl.u32 %v1767_v60, %v574_v36  ;;  %v583_v39 = vshrl.u32 %v1768_v62, %v574_v36  ;;  %v586_v53 = vshrl.u32 %v1769_v4, %v574_v36  ;;  %v588_v55 = vshll.u32 %v1769_v4, %v573_v28 }
  0xd6   : > { %v367_v29 = vand.u32 2147483647, %v366_v23  ;;  %v505_v52 = vshll.u32 %v1996_v43, 30  ;;  %v578_v57 = vor.u32 %v577_v48, %v576_v37  ;;  %v589_v34 = vshrl.u32 %v1770_v7, %v574_v36 }
  0xd7   : > { %v581_v59 = vor.u32 %v580_v51, %v579_v46  ;;  %v584_v10 = vor.u32 %v583_v39, %v582_v47  ;;  %v587_v63 = vor.u32 %v586_v53, %v585_v40  ;;  %v498_v50 = vadd.s32 %v493_v5, %v1974_v61 }
  0xd8   : > { %v370_v42 = vmul.f32 %v369_v45, %v367_v29  ;;  %v506_v60 = vsub.s32 %v502_v25, %v505_v52  ;;  %v590_v0 = vor.u32 %v589_v34, %v588_v55  ;;  %v575_v12 = vshrl.u32 %v1765_v56, %v574_v36 }
  0xd9   : > { %vm591_vm10 = vcmp.lt.s32.totalorder %v572_v49, 1  ;;  %v2022_v14 = vand.u32 65535, %v2013_v1  ;;  %vm592_vm11 = vcmp.lt.s32.totalorder %v572_v49, 2  ;;  %vm594_vm12 = vcmp.lt.s32.totalorder %v572_v49, 4 }
  0xda   : > { %v371_v38 = vxor.u32 2147483648, %v370_v42  ;;  %vm507_vm9 = vcmp.lt.s32.totalorder %v506_v60, 0  ;;  %v508_v4 = vsub.s32 0, %v506_v60  ;;  %vm593_vm13 = vcmp.lt.s32.totalorder %v572_v49, 3 }
  0xdb   : > { %v595_v33 = vsel %vm591_vm10, %v575_v12, %v578_v57  ;;  %v596_v19 = vsel %vm594_vm12, %v584_v10, 2102212464  ;;  %v599_v56 = vsel %vm591_vm10, %v578_v57, %v581_v59  ;;  %v600_v21 = vsel %vm594_vm12, %v587_v63, 920167782 }
  0xdc   : > { %v372_v58 = vsel %vm251_vm3, %v371_v38, %v370_v42  ;;  %v509_v11 = vsel %vm507_vm9, %v508_v4, %v506_v60  ;;  %v597_v5 = vsel %vm593_vm13, %v581_v59, %v596_v19  ;;  %v603_v22 = vsel %vm591_vm10, %v581_v59, %v584_v10 }
  0xdd   : > { %v375_v62 = vsel %vm1987_vm7, %v1849_v24, %v372_v58  ;;  %v510_v31 = vclz %v509_v11  ;;  %v2029_v13 = vsel %vm592_vm11, %v595_v33, %v597_v5  ;;  %vm866_vm15 = vcmp.eq.s32.totalorder %v2017_v3, 2 }
  0xde   : > { %v377_v54 = vmul.f32 %v375_v62, %v375_v62  ;;  %v601_v26 = vsel %vm593_vm13, %v584_v10, %v600_v21  ;;  %vm863_vm0 = vcmp.eq.s32.totalorder %v2017_v3, 0  ;;  %vm395_vm1 = vcmp.lt.s32.totalorder %v2015_v30, 2 }
  0xdf   : > { %v1534_v18 = vadd.s32 4294967294, %v510_v31  ;;  %v602_v32 = vsel %vm592_vm11, %v599_v56, %v601_v26  ;;  %vm862_vm2 = vcmp.lt.s32.totalorder %v2017_v3, 2  ;;  %v604_v36 = vsel %vm594_vm12, %v590_v0, 1326507024 }
  0xe0   : > { %v378_v7 = vmul.f32 -0.001358992, %v377_v54  ;;  %v385_v6 = vmul.f32 -0.00019511016, %v377_v54  ;;  %v632_v37 = vand.u32 65535, %v602_v32  ;;  %vm392_vm3 = vweird.f32 %v1849_v24 }
  0xe1   : > { %vm1535_vm14 = vcmp.lt.s32.totalorder %v1534_v18, 0  ;;  %v605_v47 = vsel %vm593_vm13, %v587_v63, %v604_v36  ;;  %v633_v48 = vshrl.u32 %v602_v32, 16  ;;  %v609_v38 = vshrl.u32 %v2013_v1, 16 }
  0xe2   : > { %v379_v17 = vadd.f32 0.041655596, %v378_v7  ;;  %v386_v15 = vadd.f32 0.008332121, %v385_v6  ;;  %v513_v25 = vsel %vm1535_vm14, 0, %v1534_v18  ;;  %v606_v40 = vsel %vm592_vm11, %v603_v22, %v605_v47 }
  0xe3   : > { %v514_v28 = vsub.s32 32, %v513_v25  ;;  %v515_v29 = vshll.u32 %v506_v60, %v513_v25  ;;  %v518_v45 = vsub.s32 4294967266, %v513_v25  ;;  %v610_v55 = vand.u32 65535, %v606_v40 }
  0xe4   : > { %v380_v20 = vmul.f32 %v379_v17, %v377_v54  ;;  %v387_v61 = vmul.f32 %v386_v15, %v377_v54  ;;  %v611_v57 = vshrl.u32 %v606_v40, 16  ;;  %vm396_vm4 = vcmp.eq.s32.totalorder %v2015_v30, 0 }
  0xe5   : > { %v516_v42 = vshrl.u32 %v498_v50, %v514_v28  ;;  %v519_v46 = vadd.s32 127, %v518_v45  ;;  %vm399_vm5 = vcmp.eq.s32.totalorder %v2015_v30, 2  ;;  %vm406_vm6 = vcmp.lt.s32.totalorder %v1858_v41, 0 }
  0xe6   : > { %v381_v23 = vadd.f32 -0.4999988, %v380_v20  ;;  %v388_v16 = vadd.f32 -0.16666654, %v387_v61  ;;  %vm2049_vm7 = vcmp.le.f32.partialorder %v404_v44, 0.7853982  ;;  %v613_v60 = vmul.u32 %v611_v57, %v2022_v14 }
  0xe7   : > { %v517_v52 = vor.u32 %v516_v42, %v515_v29  ;;  %v520_v53 = vshll.u32 %v519_v46, 23  ;;  %v635_v63 = vmul.u32 %v633_v48, %v2022_v14  ;;  %v636_v49 = vmul.u32 %v632_v37, %v609_v38 }
  0xe8   : > { %v382_v35 = vmul.f32 %v381_v23, %v377_v54  ;;  %v389_v27 = vmul.f32 %v388_v16, %v377_v54  ;;  %v612_v54 = vmul.u32 %v610_v55, %v2022_v14  ;;  %v614_v4 = vmul.u32 %v610_v55, %v609_v38 }
  0xe9   : > { %v521_v58 = vor.u32 4788187, %v520_v53  ;;  %v524_v0 = vcvt.s32.f32 %v517_v52  ;;  %v616_v44 = vshll.u32 %v613_v60, 16  ;;  %v615_v12 = vmul.u32 %v611_v57, %v609_v38 }
  0xea   : > { %v383_v51 = vadd.f32 1.0, %v382_v35  ;;  %v390_v39 = vadd.f32 1.0, %v389_v27  ;;  %v618_v17 = vshll.u32 %v614_v4, 16  ;;  %v634_v30 = vmul.u32 %v632_v37, %v2022_v14 }
  0xeb   : > { %v522_v50 = vand.u32 2147483647, %v521_v58  ;;  %vm620_vm8 = vc.u32 %v612_v54, %v616_v44  ;;  %v622_v5 = vadd.s32 %v616_v44, %v612_v54  ;;  %v638_v22 = vshll.u32 %v635_v63, 16 }
  0xec   : > { %v391_v59 = vmul.f32 %v390_v39, %v375_v62  ;;  %v400_v10 = vxor.u32 2147483648, %v383_v51  ;;  %v621_v61 = vsel %vm620_vm8, 1, %v1763_v2  ;;  %v528_v3 = vsub.s32 4, %v1996_v43 }
  0xed   : > { %v525_v33 = vmul.f32 %v524_v0, %v522_v50  ;;  %v623_v21 = vadd.s32 %v621_v61, %v615_v12  ;;  %vm624_vm9 = vc.u32 %v622_v5, %v618_v17  ;;  %v637_v23 = vmul.u32 %v633_v48, %v609_v38 }
  0xee   : > { %v397_v62 = vxor.u32 2147483648, %v391_v59  ;;  %v401_v7 = vsel %vm399_vm5, %v400_v10, %v391_v59  ;;  %v868_v6 = vsel %vm866_vm15, %v400_v10, %v391_v59  ;;  %v640_v16 = vshll.u32 %v636_v49, 16 }
  0xef   : > { %v526_v56 = vxor.u32 2147483648, %v525_v33  ;;  %v625_v24 = vsel %vm624_vm9, 1, %v1763_v2  ;;  %vm642_vm10 = vc.u32 %v634_v30, %v638_v22  ;;  %v644_v26 = vadd.s32 %v638_v22, %v634_v30 }
  0xf0   : > { %v398_v11 = vsel %vm396_vm4, %v383_v51, %v397_v62  ;;  %v865_v31 = vsel %vm863_vm0, %v383_v51, %v397_v62  ;;  %v617_v29 = vshrl.u32 %v613_v60, 16  ;;  %v627_v14 = vadd.s32 %v625_v24, %v623_v21 }
  0xf1   : > { %v402_v15 = vsel %vm395_vm1, %v398_v11, %v401_v7  ;;  %v869_v18 = vsel %vm862_vm2, %v865_v31, %v868_v6  ;;  %v527_v25 = vsel %vm406_vm6, %v526_v56, %v525_v33  ;;  %v643_v45 = vsel %vm642_vm10, 1, %v1763_v2 }
  0xf2   : > { %v403_v19 = vsel %vm392_vm3, nan, %v402_v15  ;;  %v2070_v20 = vsel %vm392_vm3, nan, %v869_v18  ;;  %v530_v28 = vsel %vm2049_vm7, %v1858_v41, %v527_v25  ;;  %v645_v35 = vadd.s32 %v643_v45, %v637_v23 }
  0xf3   : > { %1199 = vxpose.xlu1.b32.start [1/16] %v403_v19, 128  ;;  %v532_v32 = vmul.f32 %v530_v28, %v530_v28  ;;  %vm646_vm11 = vc.u32 %v644_v26, %v640_v16  ;;  %v619_v27 = vshrl.u32 %v614_v4, 16  ;;  %v628_v36 = vadd.s32 %v627_v14, %v617_v29 }
  0xf4   : > { %v647_v37 = vsel %vm646_vm11, 1, %v1763_v2  ;;  %v639_v47 = vshrl.u32 %v635_v63, 16  ;;  %v529_v51 = vsel %vm406_vm6, %v528_v3, %v1996_v43  ;;  %v648_v40 = vadd.s32 %v644_v26, %v640_v16 }
  0xf5   : > { %v533_v42 = vmul.f32 -0.001358992, %v532_v32  ;;  %v540_v46 = vmul.f32 -0.00019511016, %v532_v32  ;;  %v649_v48 = vadd.s32 %v647_v37, %v645_v35  ;;  %v629_v39 = vadd.s32 %v628_v36, %v619_v27 }
  0xf6   : > { %v641_v53 = vshrl.u32 %v636_v49, 16  ;;  %v531_v59 = vsel %vm2049_vm7, 0, %v529_v51  ;;  %v652_v43 = vmul.u32 %v2013_v1, %v2029_v13  ;;  %vm547_vm3 = vweird.f32 %v1858_v41 }
  0xf7   : > { %v534_v38 = vadd.f32 0.041655596, %v533_v42  ;;  %v541_v52 = vadd.f32 0.008332121, %v540_v46  ;;  %v650_v55 = vadd.s32 %v649_v48, %v639_v47  ;;  %v653_v57 = vadd.s32 %v648_v40, %v629_v39 }
  0xf8   : > { %vm654_vm12 = vc.u32 %v629_v39, %v648_v40  ;;  %v548_v0 = vadd.s32 3, %v531_v59  ;;  %v1015_v44 = vand.u32 3, %v531_v59  ;;  %vm561_vm6 = vcmp.lt.s32.totalorder %v1890_v8, 0 }
  0xf9   : > { %v535_v2 = vmul.f32 %v534_v38, %v532_v32  ;;  %v542_v10 = vmul.f32 %v541_v52, %v532_v32  ;;  %v651_v58 = vadd.s32 %v650_v55, %v641_v53  ;;  %vm560_vm7 = vcmp.le.f32.partialorder %v559_v9, 0.7853982 }
  0xfa   : > { %v549_v11 = vand.u32 3, %v548_v0  ;;  %vm1016_vm13 = vcmp.lt.s32.totalorder %v1015_v44, 2  ;;  %vm1017_vm14 = vcmp.eq.s32.totalorder %v1015_v44, 0  ;;  %vm1020_vm15 = vcmp.eq.s32.totalorder %v1015_v44, 2 }
  0xfb   : > { %v536_v60 = vadd.f32 -0.4999988, %v535_v2  ;;  %v543_v63 = vadd.f32 -0.16666654, %v542_v10  ;;  %v655_v62 = vadd.s32 1, %v651_v58 }
  0xfc   : > { %vm550_vm0 = vcmp.lt.s32.totalorder %v549_v11, 2  ;;  %vm551_vm1 = vcmp.eq.s32.totalorder %v549_v11, 0  ;;  %vm554_vm2 = vcmp.eq.s32.totalorder %v549_v11, 2 }
  0xfd   : > { %v537_v54 = vmul.f32 %v536_v60, %v532_v32  ;;  %v544_v4 = vmul.f32 %v543_v63, %v532_v32  ;;  %v656_v7 = vsel %vm654_vm12, %v655_v62, %v651_v58 }
  0xfe   : > { %v657_v49 = vadd.s32 %v656_v7, %v652_v43 }
  0xff   : > { %v538_v6 = vadd.f32 1.0, %v537_v54  ;;  %v545_v50 = vadd.f32 1.0, %v544_v4 }
 0x100   : > { %v658_v34 = vadd.s32 536870912, %v657_v49 }
 0x101   : > { %v546_v31 = vmul.f32 %v545_v50, %v530_v28  ;;  %v555_v12 = vxor.u32 2147483648, %v538_v6 }
 0x102   : > { %v659_v17 = vshrl.u32 %v658_v34, 30 }
 0x103   : > { %v552_v15 = vxor.u32 2147483648, %v546_v31  ;;  %v556_v18 = vsel %vm554_vm2, %v555_v12, %v546_v31  ;;  %v1022_v19 = vsel %vm1020_vm15, %v555_v12, %v546_v31  ;;  %v1189_v12 = vld [vmem:[#allocation2 + $0x8] sm:$0xff]  ;;  %vm1231_vm15 = vcmask 416768  }
 0x104   : > { %v660_v1 = vshll.u32 %v659_v17, 30  ;;  %v683_v42 = vsub.s32 4, %v659_v17 }
 0x105   : > { %v553_v13 = vsel %vm551_vm1, %v538_v6, %v552_v15  ;;  %v1019_v33 = vsel %vm1017_vm14, %v538_v6, %v552_v15  ;;  %vm702_vm14 = vweird.f32 %v1890_v8  ;;  %v1191_v15 = vld [vmem:[#allocation2 + $0x40] sm:$0xff] }
 0x106   : > { %v557_v61 = vsel %vm550_vm0, %v553_v13, %v556_v18  ;;  %v1023_v5 = vsel %vm1016_vm13, %v1019_v33, %v1022_v19  ;;  %v661_v56 = vsub.s32 %v657_v49, %v660_v1  ;;  %v684_v51 = vsel %vm561_vm6, %v683_v42, %v659_v17  ;;  %v1190_v17 = vld [vmem:[#allocation2 + $0x48] sm:$0xff]  ;;  %v1192_v1 = vld [vmem:[#allocation2 + $0x20] sm:$0xff]  ;;  %v1194_v13 = vld [vmem:[#allocation2 + $0x38] sm:$0xff] }
 0x107   : > { %v558_v21 = vsel %vm547_vm3, nan, %v557_v61  ;;  %v2091_v30 = vsel %vm547_vm3, nan, %v1023_v5  ;;  %v686_v38 = vsel %vm560_vm7, 0, %v684_v51  ;;  %v1195_v18 = vld [vmem:[#allocation2 + $0x60] sm:$0xff]  ;;  %v1196_v33 = vld [vmem:[#allocation2 + $0x70] sm:$0xff]  ;;  %v1198_v19 = vld [vmem:[#allocation2 + $0x28] sm:$0xff] }
 0x108   : > { %vm662_vm4 = vcmp.lt.s32.totalorder %v661_v56, 0  ;;  %v663_v22 = vsub.s32 0, %v661_v56  ;;  %1200 = vxpose.xlu1.b32.cont [2/16] %v558_v21, 128  ;;  %v703_v59 = vadd.s32 3, %v686_v38  ;;  %v1169_v62 = vand.u32 3, %v686_v38 }
 0x10a   : > { %v664_v3 = vsel %vm662_vm4, %v663_v22, %v661_v56  ;;  %v704_v63 = vand.u32 3, %v703_v59  ;;  %vm1174_vm9 = vcmp.eq.s32.totalorder %v1169_v62, 2  ;;  %vm1171_vm11 = vcmp.eq.s32.totalorder %v1169_v62, 0 }
 0x10b   : > { %v665_v23 = vclz %v664_v3  ;;  %vm1170_vm13 = vcmp.lt.s32.totalorder %v1169_v62, 2 }
 0x10c   : > { %vm709_vm8 = vcmp.eq.s32.totalorder %v704_v63, 2  ;;  %vm706_vm10 = vcmp.eq.s32.totalorder %v704_v63, 0  ;;  %vm705_vm12 = vcmp.lt.s32.totalorder %v704_v63, 2 }
 0x10d   : > { %v1537_v16 = vadd.s32 4294967294, %v665_v23 }
 0x10f   : > { %vm1538_vm5 = vcmp.lt.s32.totalorder %v1537_v16, 0 }
 0x110   : > { %v668_v25 = vsel %vm1538_vm5, 0, %v1537_v16 }
 0x111   : > { %v669_v24 = vsub.s32 32, %v668_v25  ;;  %v673_v26 = vsub.s32 4294967266, %v668_v25  ;;  %v670_v28 = vshll.u32 %v661_v56, %v668_v25 }
 0x113   : > { %v671_v29 = vshrl.u32 %v653_v57, %v669_v24  ;;  %v674_v14 = vadd.s32 127, %v673_v26 }
 0x115   : > { %v672_v41 = vor.u32 %v671_v29, %v670_v28  ;;  %v675_v45 = vshll.u32 %v674_v14, 23 }
 0x117   : > { %v676_v32 = vor.u32 4788187, %v675_v45  ;;  %v679_v27 = vcvt.s32.f32 %v672_v41 }
 0x119   : > { %v677_v35 = vand.u32 2147483647, %v676_v32 }
 0x11b   : > { %v680_v36 = vmul.f32 %v679_v27, %v677_v35 }
 0x11d   : > { %v681_v37 = vxor.u32 2147483648, %v680_v36 }
 0x11f   : > { %v682_v46 = vsel %vm561_vm6, %v681_v37, %v680_v36 }
 0x120   : > { %v685_v47 = vsel %vm560_vm7, %v1890_v8, %v682_v46  ;;  %v1193_v8 = vld [vmem:[#allocation2 + $0x10] sm:$0xff] }
 0x121   : > { %v687_v48 = vmul.f32 %v685_v47, %v685_v47 }
 0x123   : > { %v688_v39 = vmul.f32 -0.001358992, %v687_v48  ;;  %v695_v40 = vmul.f32 -0.00019511016, %v687_v48 }
 0x125   : > { %v689_v52 = vadd.f32 0.041655596, %v688_v39  ;;  %v696_v53 = vadd.f32 0.008332121, %v695_v40 }
 0x127   : > { %v690_v55 = vmul.f32 %v689_v52, %v687_v48  ;;  %v697_v57 = vmul.f32 %v696_v53, %v687_v48 }
 0x129   : > { %v691_v2 = vadd.f32 -0.4999988, %v690_v55  ;;  %v698_v10 = vadd.f32 -0.16666654, %v697_v57 }
 0x12b   : > { %v692_v58 = vmul.f32 %v691_v2, %v687_v48  ;;  %v699_v60 = vmul.f32 %v698_v10, %v687_v48 }
 0x12d   : > { %v693_v9 = vadd.f32 1.0, %v692_v58  ;;  %v700_v0 = vadd.f32 1.0, %v699_v60 }
 0x12f   : > { %v701_v43 = vmul.f32 %v700_v0, %v685_v47  ;;  %v710_v54 = vxor.u32 2147483648, %v693_v9 }
 0x131   : > { %v707_v4 = vxor.u32 2147483648, %v701_v43  ;;  %v711_v7 = vsel %vm709_vm8, %v710_v54, %v701_v43  ;;  %v1176_v49 = vsel %vm1174_vm9, %v710_v54, %v701_v43 }
 0x133   : > { %v708_v6 = vsel %vm706_vm10, %v693_v9, %v707_v4  ;;  %v1173_v50 = vsel %vm1171_vm11, %v693_v9, %v707_v4 }
 0x134   : > { %v712_v44 = vsel %vm705_vm12, %v708_v6, %v711_v7  ;;  %v1177_v11 = vsel %vm1170_vm13, %v1173_v50, %v1176_v49 }
 0x135   : > { %v713_v34 = vsel %vm702_vm14, nan, %v712_v44  ;;  %v1178_v31 = vsel %vm702_vm14, nan, %v1177_v11 }
 0x136   : > { %1201 = vxpose.xlu1.b32.cont [3/16] %v713_v34, 128 }
 0x13e   : > { %1202 = vxpose.xlu1.b32.cont [4/16] %v2070_v20, 128  ;;  %v1197_v20 = vld [vmem:[#allocation2 + $0x78] sm:$0xff] }
 0x146   : > { %1203 = vxpose.xlu1.b32.cont [5/16] %v2091_v30, 128 }
 0x14e   : > { %1204 = vxpose.xlu1.b32.cont [6/16] %v1178_v31, 128 }
 0x156   : > { %1205 = vxpose.xlu1.b32.cont [7/16] %v1189_v12, 128 }
 0x15e   : > { %1206 = vxpose.xlu1.b32.cont [8/16] %v1190_v17, 128 }
 0x166   : > { %1207 = vxpose.xlu1.b32.cont [9/16] %v1191_v15, 128 }
 0x16e   : > { %1208 = vxpose.xlu1.b32.cont [10/16] %v1192_v1, 128 }
 0x176   : > { %1209 = vxpose.xlu1.b32.cont [11/16] %v1193_v8, 128 }
 0x17e   : > { %1210 = vxpose.xlu1.b32.cont [12/16] %v1194_v13, 128 }
 0x186   : > { %1211 = vxpose.xlu1.b32.cont [13/16] %v1195_v18, 128 }
 0x18e   : > { %1212 = vxpose.xlu1.b32.cont [14/16] %v1196_v33, 128 }
 0x196   : > { %1213 = vxpose.xlu1.b32.cont [15/16] %v1197_v20, 128 }
 0x19e   : > { %1214 = vxpose.xlu1.b32.end [16/16] %v1198_v19, 128 }
 0x1ca   : > { %v1215_v61 = vpop.trf.xlu1 }
 0x1cb   : > { %1232 = vst.msk [vmem:[%s2101_s17] sm:$0xff] %vm1231_vm15, %v1215_v61 }
 0x1d2   : > { %v1216_v5 = vpop.trf.xlu1 }
 0x1d3   : > { %1233 = vst.msk [vmem:[%s2101_s17 + $0x8] sm:$0xff] %vm1231_vm15, %v1216_v5 }
 0x1da   : > { %v1217_v56 = vpop.trf.xlu1 }
 0x1db   : > { %1234 = vst.msk [vmem:[%s2101_s17 + $0x10] sm:$0xff] %vm1231_vm15, %v1217_v56 }
 0x1e2   : > { %v1218_v21 = vpop.trf.xlu1 }
 0x1e3   : > { %1235 = vst.msk [vmem:[%s2101_s17 + $0x18] sm:$0xff] %vm1231_vm15, %v1218_v21 }
 0x1ea   : > { %v1219_v30 = vpop.trf.xlu1 }
 0x1eb   : > { %1236 = vst.msk [vmem:[%s2101_s17 + $0x20] sm:$0xff] %vm1231_vm15, %v1219_v30 }
 0x1f2   : > { %v1220_v22 = vpop.trf.xlu1 }
 0x1f3   : > { %1237 = vst.msk [vmem:[%s2101_s17 + $0x28] sm:$0xff] %vm1231_vm15, %v1220_v22 }
 0x1fa   : > { %v1221_v3 = vpop.trf.xlu1 }
 0x1fb   : > { %1238 = vst.msk [vmem:[%s2101_s17 + $0x30] sm:$0xff] %vm1231_vm15, %v1221_v3 }
 0x202   : > { %v1222_v23 = vpop.trf.xlu1 }
 0x203   : > { %1239 = vst.msk [vmem:[%s2101_s17 + $0x38] sm:$0xff] %vm1231_vm15, %v1222_v23 }
 0x20a   : > { %v1223_v16 = vpop.trf.xlu1 }
 0x20b   : > { %1240 = vst.msk [vmem:[%s2101_s17 + $0x40] sm:$0xff] %vm1231_vm15, %v1223_v16 }
 0x212   : > { %v1224_v25 = vpop.trf.xlu1 }
 0x213   : > { %1241 = vst.msk [vmem:[%s2101_s17 + $0x48] sm:$0xff] %vm1231_vm15, %v1224_v25 }
 0x21a   : > { %v1225_v24 = vpop.trf.xlu1 }
 0x21b   : > { %1242 = vst.msk [vmem:[%s2101_s17 + $0x50] sm:$0xff] %vm1231_vm15, %v1225_v24 }
 0x222   : > { %v1226_v26 = vpop.trf.xlu1 }
 0x223   : > { %1243 = vst.msk [vmem:[%s2101_s17 + $0x58] sm:$0xff] %vm1231_vm15, %v1226_v26 }
 0x22a   : > { %v1227_v28 = vpop.trf.xlu1 }
 0x22b   : > { %1244 = vst.msk [vmem:[%s2101_s17 + $0x60] sm:$0xff] %vm1231_vm15, %v1227_v28 }
 0x232   : > { %v1228_v29 = vpop.trf.xlu1 }
 0x233   : > { %1245 = vst.msk [vmem:[%s2101_s17 + $0x68] sm:$0xff] %vm1231_vm15, %v1228_v29 }
 0x23a   : > { %v1229_v14 = vpop.trf.xlu1 }
 0x23b   : > { %1246 = vst.msk [vmem:[%s2101_s17 + $0x70] sm:$0xff] %vm1231_vm15, %v1229_v14 }
 0x23f   : > { %1254 = sbr.rel (!%p1816_p4) target bundleno = 628 (0x274), region = 36 }
 0x242   : > { %v1230_v41 = vpop.trf.xlu1 }
 0x243   : > { %1247 = vst.msk [vmem:[%s2101_s17 + $0x78] sm:$0xff] %vm1231_vm15, %v1230_v41 }
 0x244   : > { %s2257_s21 = smov (!%p1257_p8, %s1256_s21), 16 }
 0x245   : > { %s1550_s25 = sshll.u32 %s2257_s21, 3 }
 0x246   : > { %p1553_p9 = scmp.eq.s32.totalorder %s1550_s25, 0 }
 0x247   : > { %s2148_s20 = sshrl.u32 (!%p1553_p9), %s2257_s21, 4 }
 0x248   : > { %1265 = sbr.rel (%p1553_p9) target bundleno = 628 (0x274), region = 40  ;;  %p1554_p10 = scmp.le.s32.totalorder (!%p1553_p9), %s2148_s20, 0 }
 0x24d   : > { %1480 = sbr.rel (%p1554_p10) target bundleno = 611 (0x263), region = 116  ;;  %s2248_s15 = smov (!%p1554_p10), %s2142_s24 }
 0x24e   : > { %s2249_s26 = smov (!%p1554_p10), %s2101_s17  ;;  %s2157_s27 = smov (!%p1554_p10), 0  }
 0x24f   : > { %s2159_s28 = smov (!%p1554_p10), 0  }
 0x252 LB: >> { %v1358_v45 = vld [vmem:[%s1736_s26] sm:$0xff]  ;;  %v1360_v32 = vld [vmem:[%s1736_s26 + $0x8] sm:$0xff]  ;;  %v1362_v35 = vld [vmem:[%s1736_s26 + $0x10] sm:$0xff]  ;;  %s1390_s29 = sadd.s32 1, %s1740_s27  ;;  %s1352_s28 = sadd.s32 1, %s1744_s28   ;;  %s1744_s28 = sphi %s2159_s28, %s1352_s28   ;;  %s1740_s27 = sphi %s2157_s27, %s2252_s27   ;;  %s1736_s26 = sphi %s2249_s26, %s2251_s26   ;;  %s1732_s15 = sphi %s2248_s15, %s2250_s15  }
 0x253   : >> { %1359 = vst [vmem:[%s1732_s15] sm:$0xff] %v1358_v45  ;;  %v1364_v27 = vld [vmem:[%s1736_s26 + $0x18] sm:$0xff]  ;;  %p1391_p11 = scmp.ge.s32.totalorder %s1390_s29, %s2148_s20  ;;  %v1366_v36 = vld [vmem:[%s1736_s26 + $0x20] sm:$0xff]  ;;  %v1368_v37 = vld [vmem:[%s1736_s26 + $0x28] sm:$0xff]  ;;  %p1351_p12 = scmp.ge.s32.totalorder %s1352_s28, %s2148_s20 }
 0x254   : >> { %1361 = vst [vmem:[%s1732_s15 + $0x8] sm:$0xff] %v1360_v32  ;;  %v1370_v42 = vld [vmem:[%s1736_s26 + $0x30] sm:$0xff]  ;;  %v1372_v46 = vld [vmem:[%s1736_s26 + $0x38] sm:$0xff]  ;;  %v1374_v47 = vld [vmem:[%s1736_s26 + $0x40] sm:$0xff] }
 0x255   : >> { %1363 = vst [vmem:[%s1732_s15 + $0x10] sm:$0xff] %v1362_v35  ;;  %s2259_s29 = smov (%p1391_p11, %s1390_s29), 0  ;;  %v1376_v48 = vld [vmem:[%s1736_s26 + $0x48] sm:$0xff]  ;;  %v1378_v51 = vld [vmem:[%s1736_s26 + $0x50] sm:$0xff]  ;;  %v1380_v39 = vld [vmem:[%s1736_s26 + $0x58] sm:$0xff] }
 0x256   : >> { %1365 = vst [vmem:[%s1732_s15 + $0x18] sm:$0xff] %v1364_v27  ;;  %s1555_s30 = sshll.u32 %s2259_s29, 7  ;;  %v1382_v40 = vld [vmem:[%s1736_s26 + $0x60] sm:$0xff]  ;;  %v1384_v38 = vld [vmem:[%s1736_s26 + $0x68] sm:$0xff]  ;;  %v1386_v52 = vld [vmem:[%s1736_s26 + $0x70] sm:$0xff]  ;;  %s2252_s27 = smov %s2259_s29 }
 0x257   : >> { %1367 = vst [vmem:[%s1732_s15 + $0x20] sm:$0xff] %v1366_v36  ;;  %s1395_s4 = scalar_lea.vmem %s2101_s17, %s1555_s30 [#allocation3]   ;;  %s1396_s5 = scalar_lea.vmem %s2142_s24, %s1555_s30   ;;  %v1388_v53 = vld [vmem:[%s1736_s26 + $0x78] sm:$0xff] }
 0x258   : >> { %1369 = vst [vmem:[%s1732_s15 + $0x28] sm:$0xff] %v1368_v37  ;;  %s2251_s26 = smov %s1395_s4 }
 0x259   : >> { %1371 = vst [vmem:[%s1732_s15 + $0x30] sm:$0xff] %v1370_v42 }
 0x25a   : >> { %1373 = vst [vmem:[%s1732_s15 + $0x38] sm:$0xff] %v1372_v46 }
 0x25b   : >> { %1375 = vst [vmem:[%s1732_s15 + $0x40] sm:$0xff] %v1374_v47 }
 0x25c   : >> { %1377 = vst [vmem:[%s1732_s15 + $0x48] sm:$0xff] %v1376_v48 }
 0x25d   : >> { %1379 = vst [vmem:[%s1732_s15 + $0x50] sm:$0xff] %v1378_v51 }
 0x25e   : >> { %1381 = vst [vmem:[%s1732_s15 + $0x58] sm:$0xff] %v1380_v39  ;;  %1354 = sbr.rel (!%p1351_p12) target bundleno = 594 (0x252), region = 122 }
 0x25f   : >> { %1383 = vst [vmem:[%s1732_s15 + $0x60] sm:$0xff] %v1382_v40 }
 0x260   : >> { %1385 = vst [vmem:[%s1732_s15 + $0x68] sm:$0xff] %v1384_v38 }
 0x261   : >> { %1387 = vst [vmem:[%s1732_s15 + $0x70] sm:$0xff] %v1386_v52 }
 0x262   : >> { %1389 = vst [vmem:[%s1732_s15 + $0x78] sm:$0xff] %v1388_v53  ;;  %s2250_s15 = smov %s1396_s5 }
 0x263 PF: > { %s2221_s6 = sand.u32 15, %s2257_s21   ;;  %s1566_s7 = sshll.u32 %s2148_s20, 7 }
 0x264   : > { %s1401_s8 = scalar_lea.vmem %s2101_s17, %s1566_s7 [#allocation3]   ;;  %s1403_s9 = scalar_lea.vmem %s2142_s24, %s1566_s7  }
 0x265   : > { %p1560_p13 = scmp.le.s32.totalorder %s2221_s6, 0 }
 0x266   : > { %s1746_s10 = smov (!%p1560_p13), %s1403_s9   ;;  %s1750_s11 = smov (!%p1560_p13), %s1401_s8  }
 0x267   : > { %1494 = sbr.rel (%p1560_p13) target bundleno = 628 (0x274), region = 127  ;;  %s1754_s14 = smov (!%p1560_p13), 0  }
 0x268   : > { %s1758_s12 = smov (!%p1560_p13), 0  }
 0x26c LB: >> { %v1413_v55 = vld [vmem:[%s1752_s11] sm:$0xff]  ;;  %s1415_s18 = sadd.s32 1, %s1756_s14  ;;  %s1407_s12 = sadd.s32 1, %s1760_s12   ;;  %s1760_s12 = sphi %s1758_s12, %s1407_s12   ;;  %s1756_s14 = sphi %s1754_s14, %s1755_s14   ;;  %s1752_s11 = sphi %s1750_s11, %s1420_s11   ;;  %s1748_s10 = sphi %s1746_s10, %s1421_s10  }
 0x26d   : >> { %1414 = vst [vmem:[%s1748_s10] sm:$0xff] %v1413_v55  ;;  %p1416_p0 = scmp.ge.s32.totalorder %s1415_s18, %s2221_s6  ;;  %p1406_p1 = scmp.ge.s32.totalorder %s1407_s12, %s2221_s6 }
 0x26f   : >> { %s2261_s18 = smov (%p1416_p0, %s1415_s18), 0  ;;  %1409 = sbr.rel (!%p1406_p1) target bundleno = 620 (0x26c), region = 133 }
 0x270   : >> { %s1561_s17 = sshll.u32 %s2261_s18, 3  ;;  %s1755_s14 = smov %s2261_s18  }
 0x271   : >> { %s1420_s11 = scalar_lea.vmem %s1401_s8, %s1561_s17 [#allocation3]   ;;  %s1421_s10 = scalar_lea.vmem %s1403_s9, %s1561_s17  }
 0x274 PF: > { %p10_p2 = scmp.ge.s32.totalorder %s1806_s16, 5   ;;  %s2253_s12 = smov %s1724_s13 }
 0x275   : > { %s2254_s13 = smov %s1814_s19  ;;  %s2255_s14 = smov %s1806_s16 }
 0x276   :  { %12 = sbr.rel (!%p10_p2) target bundleno = 2 (0x2), region = 144 }

</bundles_post_ra>
